<compile_context>
chip_gen: v5e
topology: v5e:2x2
jax: 0.10.0
libtpu: 0.0.40
codegen_flags: <defaults>
</compile_context>

<pallas_src>
import jax
import jax.numpy as jnp
from jax.experimental import pallas as pl
from jax.experimental.pallas import tpu as pltpu


def _round_up(x: int, m: int) -> int:
    return (x + m - 1) // m * m


def _proj_kernel(x_ref, w_ref, bp_ref, o_ref):
    # x_ref : (1, TN, K)      compute dtype (bf16 at real sizes)
    # w_ref : (K, D_pad)      compute dtype, resident across the whole grid
    # bp_ref: (1, 1, D_pad)   f32, bias + per-batch positional embedding
    # o_ref : (1, TN, D_pad)  f32, lane-dense full-tile store
    acc = jnp.dot(x_ref[0], w_ref[...], preferred_element_type=jnp.float32)
    o_ref[0] = (acc + bp_ref[0]).astype(o_ref.dtype)


def _patchify(x, patch_size):
    """NCHW -> (B, N, P), feature order (p1, p2, c), channel innermost
    (matches einops 'b c (h p1) (w p2) -> b (h w) (p1 p2 c')."""
    B, C, H, W = x.shape
    p = patch_size
    h, w = H // p, W // p
    x = x.reshape(B, C, h, p, w, p)
    x = jnp.transpose(x, (0, 2, 4, 3, 5, 1))      # b h w p1 p2 c
    return x.reshape(B, h * w, p * p * C)


def _weight_spec(K, D_pad):
    index_map = lambda b, n: (0, 0)
    try:
        # Single-buffer the constant-index weight (it is only DMA'd once):
        # halves its VMEM footprint, which matters under v7x's 64 MiB/TC budget.
        return pl.BlockSpec((K, D_pad), index_map, pipeline_mode=pl.Buffered(1))
    except (TypeError, AttributeError):
        return pl.BlockSpec((K, D_pad), index_map)


def input_embedding(x, weight, bias, class_token, pos_embedding, patch_size,
                    seq_tile=512, compute_dtype=jnp.bfloat16):
    """Forward pass of InputEmbedding.

    x:             (B, C, H, W) f32 image
    weight:        (D, P) nn.Linear weight (P = patch*patch*C)
    bias:          (D,)
    class_token:   (B, 1, D)
    pos_embedding: (B, 1, D)   (broadcast over all sequence positions)
    returns:       (B, N+1, D) f32
    """
    B = x.shape[0]
    D, P = weight.shape

    # ---- layout glue (plain JAX) -------------------------------------------
    patches = _patchify(x, patch_size)                      # (B, N, P)
    N = patches.shape[1]

    # Tile / padding choices: lane-dense K and D (multiples of 128), seq tile a
    # multiple of 8 (sublanes).  At real ViT sizes (N ~ 196) each grid step
    # processes one batch's full padded sequence.
    TN = min(seq_tile, _round_up(N, 8))
    N_pad = _round_up(N, TN)
    K = _round_up(P, 128)
    D_pad = _round_up(D, 128)   # v6e/v7x: round odd embed dims to 256 instead

    if (N_pad, K) != (N, P):                                # guarded no-op pad
        patches = jnp.pad(patches, ((0, 0), (0, N_pad - N), (0, K - P)))
    w_t = weight.T                                          # (P, D)
    if (K, D_pad) != (P, D):
        w_t = jnp.pad(w_t, ((0, K - P), (0, D_pad - D)))

    bias_plus_pos = bias[None, None, :] + pos_embedding     # (B, 1, D), f32
    if D_pad != D:
        bias_plus_pos = jnp.pad(bias_plus_pos, ((0, 0), (0, 0), (0, D_pad - D)))

    # bf16 inputs halve the dominant HBM read and use the native bf16 MXU path;
    # f32 accumulate + f32 bias/pos epilogue keep the result close to the f32 ref.
    x_in = patches.astype(compute_dtype)
    w_in = w_t.astype(compute_dtype)
    bp_in = bias_plus_pos.astype(jnp.float32)

    # Scoped-VMEM budget covering the tile set, with 2x headroom.
    itm = jnp.dtype(compute_dtype).itemsize
    tile_bytes = (2 * TN * K * itm          # double-buffered patch tile
                  + K * D_pad * itm         # resident weight (single-buffered)
                  + 2 * D_pad * 4           # bias + pos row
                  + 2 * TN * D_pad * 4)     # double-buffered f32 output tile
    vmem_limit = int(min(64 << 20, max(32 << 20, 2 * tile_bytes)))

    grid = (B, N_pad // TN)
    proj = pl.pallas_call(
        _proj_kernel,
        out_shape=jax.ShapeDtypeStruct((B, N_pad, D_pad), jnp.float32),
        grid_spec=pltpu.PrefetchScalarGridSpec(
            num_scalar_prefetch=0,
            grid=grid,
            in_specs=[
                pl.BlockSpec((1, TN, K), lambda b, n: (b, n, 0)),      # patch tile
                _weight_spec(K, D_pad),                                # resident W^T
                pl.BlockSpec((1, 1, D_pad), lambda b, n: (b, 0, 0)),   # bias+pos[b]
            ],
            out_specs=pl.BlockSpec((1, TN, D_pad), lambda b, n: (b, n, 0)),
        ),
        compiler_params=pltpu.CompilerParams(
            dimension_semantics=("parallel", "parallel"),   # megacore split
            vmem_limit_bytes=vmem_limit,
        ),
    )(x_in, w_in, bp_in)

    # ---- epilogue glue: drop padding, prepend class token ------------------
    # TODO(synk): at production scale, fuse the class-token row into the kernel
    # output (Element-offset seq indexing) to avoid this extra concat HBM pass.
    proj = proj[:, :N, :D]                                  # (B, N, D)
    cls_plus_pos = class_token + pos_embedding              # (B, 1, D)
    return jnp.concatenate([cls_plus_pos, proj], axis=1)    # (B, N+1, D)


if __name__ == "__main__":
    # Small shapes consistent with the module
    batch_size = 2
    n_channels = 4
    patch_size = 4
    img_size = 16
    embed_dim = 32
    input_size = patch_size * patch_size * n_channels    # 64
    n_patches = (img_size // patch_size) ** 2             # 16

    key = jax.random.PRNGKey(0)
    k_x, k_w, k_b, k_cls, k_pos = jax.random.split(key, 5)

    x = jax.random.normal(k_x, (batch_size, n_channels, img_size, img_size),
                          dtype=jnp.float32)
    weight = jax.random.normal(k_w, (embed_dim, input_size), jnp.float32) * 0.05
    bias = jax.random.normal(k_b, (embed_dim,), jnp.float32) * 0.05
    class_token = jax.random.normal(k_cls, (batch_size, 1, embed_dim), jnp.float32)
    pos_embedding = jax.random.normal(k_pos, (batch_size, 1, embed_dim), jnp.float32)

    out = input_embedding(x, weight, bias, class_token, pos_embedding, patch_size)
    out = jax.block_until_ready(out)
    assert out.shape == (batch_size, n_patches + 1, embed_dim)

    # Reference 1: bf16-consistent (same input rounding as the kernel, f32 accumulate).
    ref_patches = _patchify(x, patch_size)                             # (B, N, P)
    ref_proj16 = jnp.dot(ref_patches.astype(jnp.bfloat16),
                         weight.T.astype(jnp.bfloat16),
                         preferred_element_type=jnp.float32) + bias
    ref16 = jnp.concatenate([class_token, ref_proj16], axis=1) + pos_embedding
    assert jnp.allclose(out, ref16, atol=5e-3, rtol=5e-3), "mismatch vs bf16 reference"

    # Reference 2: pure f32 forward of the module (loose tol for bf16 inputs).
    ref_proj32 = ref_patches @ weight.T + bias
    ref32 = jnp.concatenate([class_token, ref_proj32], axis=1) + pos_embedding
    assert jnp.allclose(out, ref32, atol=5e-2, rtol=5e-2), "mismatch vs f32 reference"

    print("KERNEL_OK")
</pallas_src>

<mosaic_0001>
module attributes {stable_mosaic.version = 11 : i64} {
  func.func @_proj_kernel(%arg0: i32, %arg1: i32, %arg2: memref<1x16x128xbf16, #tpu.memory_space<vmem>>, %arg3: memref<128x128xbf16, #tpu.memory_space<vmem>>, %arg4: memref<1x1x128xf32, #tpu.memory_space<vmem>>, %arg5: memref<1x16x128xf32, #tpu.memory_space<vmem>>) attributes {dimension_semantics = [#tpu.dimension_semantics<parallel>, #tpu.dimension_semantics<parallel>], iteration_bounds = array<i64: 2, 1>, scalar_prefetch = 0 : i64, scratch_operands = 0 : i64, tpu.core_type = #tpu.core_type<tc>, window_params = [{transform_indices = @transform_0, window_bounds = array<i64: 1, 16, 128>}, {pipeline_mode = #tpu.pipeline_mode<synchronous>, transform_indices = @transform_1, window_bounds = array<i64: 128, 128>}, {transform_indices = @transform_2, window_bounds = array<i64: 1, 1, 128>}, {transform_indices = @transform_3, window_bounds = array<i64: 1, 16, 128>}]} {
    %c0 = arith.constant 0 : index
    %c0_0 = arith.constant 0 : index
    %c0_1 = arith.constant 0 : index
    %0 = vector.load %arg2[%c0, %c0_0, %c0_1] : memref<1x16x128xbf16, #tpu.memory_space<vmem>>, vector<1x16x128xbf16>
    %1 = vector.shape_cast %0 : vector<1x16x128xbf16> to vector<16x128xbf16>
    %c0_2 = arith.constant 0 : index
    %c0_3 = arith.constant 0 : index
    %2 = vector.load %arg3[%c0_2, %c0_3] : memref<128x128xbf16, #tpu.memory_space<vmem>>, vector<128x128xbf16>
    %cst = arith.constant dense<0.000000e+00> : vector<16x128xf32>
    %3 = tpu.matmul %1, %2, %cst {dimension_numbers = #tpu.dot_dimension_numbers<[1], [0], [0], [1], [0, 0, 1, 1], [], []>} : vector<16x128xbf16>, vector<128x128xbf16>, vector<16x128xf32> -> vector<16x128xf32>
    %c0_4 = arith.constant 0 : index
    %c0_5 = arith.constant 0 : index
    %c0_6 = arith.constant 0 : index
    %4 = vector.load %arg4[%c0_4, %c0_5, %c0_6] : memref<1x1x128xf32, #tpu.memory_space<vmem>>, vector<1x1x128xf32>
    %5 = vector.shape_cast %4 : vector<1x1x128xf32> to vector<1x128xf32>
    %6 = vector.broadcast %5 : vector<1x128xf32> to vector<16x128xf32>
    %7 = arith.addf %3, %6 : vector<16x128xf32>
    %c0_7 = arith.constant 0 : index
    %c0_8 = arith.constant 0 : index
    %c0_9 = arith.constant 0 : index
    %8 = vector.load %arg5[%c0_7, %c0_8, %c0_9] : memref<1x16x128xf32, #tpu.memory_space<vmem>>, vector<1x16x128xf32>
    %9 = vector.shape_cast %8 : vector<1x16x128xf32> to vector<16x128xf32>
    %10 = vector.shape_cast %7 : vector<16x128xf32> to vector<1x16x128xf32>
    tpu.vector_store %arg5[%c0_7, %c0_8, %c0_9], %10 {strides = array<i32>} : memref<1x16x128xf32, #tpu.memory_space<vmem>>, vector<1x16x128xf32>,
    return
  }
  func.func @transform_0(%arg0: i32, %arg1: i32) -> (i32, i32, i32) {
    %c0_i32 = arith.constant 0 : i32
    %c0_i32_0 = arith.constant 0 : i32
    return %arg0, %arg1, %c0_i32 : i32, i32, i32
  }
  func.func @transform_1(%arg0: i32, %arg1: i32) -> (i32, i32) {
    %c0_i32 = arith.constant 0 : i32
    %c0_i32_0 = arith.constant 0 : i32
    %c0_i32_1 = arith.constant 0 : i32
    return %c0_i32, %c0_i32_0 : i32, i32
  }
  func.func @transform_2(%arg0: i32, %arg1: i32) -> (i32, i32, i32) {
    %c0_i32 = arith.constant 0 : i32
    %c0_i32_0 = arith.constant 0 : i32
    %c0_i32_1 = arith.constant 0 : i32
    return %arg0, %c0_i32, %c0_i32_0 : i32, i32, i32
  }
  func.func @transform_3(%arg0: i32, %arg1: i32) -> (i32, i32, i32) {
    %c0_i32 = arith.constant 0 : i32
    %c0_i32_0 = arith.constant 0 : i32
    return %arg0, %arg1, %c0_i32 : i32, i32, i32
  }
}

</mosaic_0001>

<bundles_post_ra>
// kernel: tpu_custom_call.1
= control target key start
LH: loop header
LB: loop body
LE: loop exit
PB: predicated region body
PF: predicated region fallthrough
CT: control target
= control target key end

     0   :  { %8 = vsyncpa [#allocation3], 0  ;;  %s1019_s0 = inlined_call_operand.hbm [shape: bf16[2,16,128], index: 0, kind: input, shape index: {}]   ;;  %s1020_s1 = inlined_call_operand.hbm [shape: bf16[128,128], index: 1, kind: input, shape index: {}]   ;;  %s1021_s2 = inlined_call_operand.hbm [shape: f32[2,1,128], index: 2, kind: input, shape index: {}]   ;;  %s1022_s3 = inlined_call_operand.hbm [shape: f32[2,16,128], index: 3, kind: output, shape index: {}]  }
   0x1   :  { %10 = vsyncpa [#allocation3 + $0x1], 0 }
   0x2   :  { %11 = vsyncpa [#allocation6], 0 }
   0x3   :  { %12 = vsyncpa [#allocation4], 0 }
   0x4   :  { %14 = vsyncpa [#allocation4 + $0x1], 0  ;;  %s837_s12 = smov 0   ;;  %s839_s13 = smov 0  }
   0x5   :  { %s841_s14 = smov 0   ;;  %s843_s15 = smov 0  }
   0x6   :  { %s845_s16 = smov 0   ;;  %s847_s17 = smov 0  }
   0x7 LB: > { %s32_s18 = sadd.s32 1, %s806_s16  ;;  %s41_s19 = sadd.s32 1, %s798_s14  ;;  %s810_s17 = sphi %s847_s17, %s20_s17   ;;  %s806_s16 = sphi %s845_s16, %s1033_s16   ;;  %s802_s15 = sphi %s843_s15, %s1032_s15   ;;  %s798_s14 = sphi %s841_s14, %s1031_s14   ;;  %s794_s13 = sphi %s839_s13, %s1030_s13   ;;  %s790_s12 = sphi %s837_s12, %s1029_s12  }
   0x8   : > { %p34_p0 = scmp.ge.s32.totalorder %s32_s18, 2  ;;  %p48_p1 = scmp.ne.s32.totalorder %s798_s14, %s794_s13 }
   0x9   : > { %p49_p2 = scmp.eq.s32.totalorder %s810_s17, 0  ;;  %p487_p4 = scmp.ge.s32.totalorder %s810_s17, 2 }
   0xa   : > { %s1035_s18 = smov (%p34_p0, %s32_s18), 0  ;;  %p573_p6 = scmp.lt.s32.totalorder %s810_s17, 2 }
   0xb   : > { %p877_p3 = por %p49_p2, %p48_p1  ;;  %s36_s21 = ssub.s32 %s806_s16, %s1035_s18 }
   0xc   : > { %p39_p5 = scmp.eq.s32.totalorder %s36_s21, 0  ;;  %s167_s22 = sand.u32 1, %s810_s17  }
   0xd   : > { %s169_s23 = sand.u32 1, %s798_s14   ;;  %s536_s26 = sshll.u32 %s806_s16, 3 }
   0xe   : > { %s888_s24 = scalar_select %p39_p5, %s798_s14, %s41_s19  }
   0xf   : > { %s488_s25 = sshll.u32 %s169_s23, 3  ;;  %s178_s29 = scalar_lea.hbm %s1019_s0, %s536_s26 }
  0x10   : > { %s171_s30 = scalar_lea.vmem [#allocation2], %s488_s25  ;;  %s179_s5 = sshll.u32 %s178_s29, 4  ;;  %s180_s5 = int_to_ptr.hbm [resolvable:$true] %s179_s5 }
  0x11   : > { %s181_s4 = sshll.u32 %s171_s30, 4  ;;  %p898_p7 = pnand %p573_p6, %p877_p3  ;;  %s182_s4 = int_to_ptr.vmem [resolvable:$true] %s181_s4 }
  0x12   : > { %s902_s7 = scalar_lea.sflag [#allocation3], %s167_s22  ;;  %s812_s8 = smov 64  }
  0x13   : > { %s813_s9 = smov 4   ;;  %s911_s10 = sadd.s32 4294967295, %s810_s17  }
  0x14   : > { %564 = dma.hbm_to_vmem [thread:$0]  (!%p898_p7), %s180_s5, 128, %s182_s4, %s902_s7, %s812_s8, %s812_s8, %s813_s9  }
  0x15   : > { %s484_s11 = sadd.s32 4294967294, %s810_s17   ;;  %p54_p8 = scmp.ne.s32.totalorder %s794_s13, %s790_s12 }
  0x16   : > { %p55_p9 = scmp.eq.s32.totalorder %s911_s10, 0  ;;  %p127_p10 = scmp.eq.s32.totalorder %s911_s10, 1 }
  0x17   : > { %p133_p11 = scmp.eq.s32.totalorder %s484_s11, 1  ;;  %p485_p12 = scmp.ge.s32.totalorder %s810_s17, 1 }
  0x18   : > { %p921_p13 = por %p55_p9, %p54_p8  ;;  %p928_p0 = por %p127_p10, %p48_p1 }
  0x19   : > { %p932_p2 = por %p133_p11, %p54_p8  ;;  %p140_p3 = scmp.lt.s32.totalorder %s810_s17, 3 }
  0x1a   : > { %s151_s26 = sshll.u32 %s1020_s1, 4  ;;  %s814_s28 = smov [#allocation5]   ;;  %s152_s26 = int_to_ptr.hbm [resolvable:$true] %s151_s26 }
  0x1b   : > { %p940_p5 = pnand %p485_p12, %p140_p3  ;;  %s153_s29 = sshll.u32 %s814_s28, 4  ;;  %s154_s29 = int_to_ptr.vmem [resolvable:$true] %s153_s29 }
  0x1c   : > { %s197_s5 = scalar_lea.hbm %s1021_s2, %s806_s16  ;;  %s194_s22 = scalar_lea.vmem [#allocation7], %s169_s23 }
  0x1d   : > { %p557_p1 = pneg %p940_p5  ;;  %s199_s11 = sshll.u32 %s197_s5, 4  ;;  %s200_s11 = int_to_ptr.hbm [resolvable:$true] %s199_s11 }
  0x1e   : > { %s201_s25 = sshll.u32 %s194_s22, 4  ;;  %210 = sbr.rel (%p940_p5) target bundleno = 214 (0xd6), region = 32  ;;  %s202_s25 = int_to_ptr.vmem [resolvable:$true] %s201_s25 }
  0x1f   : > { %p558_p6 = pnand %p557_p1, %p55_p9  ;;  %s212_s28 = sand.u32 (!%p940_p5), 1, %s911_s10  }
  0x20   : > { %567 = dma.hbm_to_vmem [thread:$0]  (!%p898_p7), %s200_s11, 16, %s202_s25, %s902_s7  }
  0x21   : > { %560 = dma.hbm_to_vmem [thread:$0]  (!%p558_p6), %s152_s26, 1024, %s154_s29, [#allocation6], %s812_s8, %s812_s8, %s813_s9  }
  0x22   : > { %s964_s30 = sand.u32 (!%p940_p5), 1, %s794_s13   ;;  %s213_s23 = scalar_lea.sflag (!%p940_p5), [#allocation3], %s212_s28 }
  0x23   : > { %s492_s4 = sshll.u32 %s964_s30, 3 }
  0x24   : > { %s216_s5 = scalar_lea.vmem [#allocation2], %s492_s4 }
  0x25   : > { %773 = dma.done.wait (%p921_p13), %s213_s23, 128  }
  0x26   : > { %775 = vsyncadd (%p921_p13), %s213_s23, 4294967168 }
  0x27   : > { %777 = dma.done.wait (%p55_p9), [#allocation6], 1024  }
  0x28   : > { %779 = vsyncadd (%p55_p9), [#allocation6], 4294966272  ;;  %s230_s6 = scalar_lea.vmem [#allocation7], %s964_s30 }
  0x29   : > { %781 = dma.done.wait (%p921_p13), %s213_s23, 16  }
  0x2a   : > { %783 = vsyncadd (%p921_p13), %s213_s23, 4294967280  ;;  %v545_v0 = vld [vmem:[#allocation5 + $0x38] sm:$0xff]  ;;  %v544_v1 = vld [vmem:[#allocation5 + $0x30] sm:$0xff]  ;;  %s494_s7 = sshll.u32 %s964_s30, 4  ;;  %s546_s8 = sshll.u32 %s802_s15, 4 }
  0x2b   : > { %336 = vmatpush.bf16.msra.mxu0 %v545_v0  ;;  %v543_v2 = vld [vmem:[#allocation5 + $0x28] sm:$0xff]  ;;  %v542_v3 = vld [vmem:[#allocation5 + $0x20] sm:$0xff]  ;;  %v541_v4 = vld [vmem:[#allocation5 + $0x18] sm:$0xff]  ;;  %s366_s19 = scalar_lea.hbm %s1022_s3, %s546_s8  ;;  %s257_s26 = scalar_lea.vmem [#allocation8], %s494_s7 }
  0x2c   : > { %v540_v5 = vld [vmem:[#allocation5 + $0x10] sm:$0xff]  ;;  %v539_v6 = vld [vmem:[#allocation5 + $0x8] sm:$0xff]  ;;  %v538_v7 = vld [vmem:[#allocation5] sm:$0xff]  ;;  %s367_s27 = sshll.u32 %s257_s26, 4  ;;  %s369_s29 = sshll.u32 %s366_s19, 4  ;;  %s368_s27 = int_to_ptr.vmem [resolvable:$true] %s367_s27  ;;  %s370_s29 = int_to_ptr.hbm [resolvable:$true] %s369_s29 }
  0x2d   : > { %v537_v8 = vld [vmem:[%s216_s5] sm:$0xff]  ;;  %s353_s11 = scalar_lea.sflag [#allocation4], %s964_s30  ;;  %s734_s22 = sshra.s32 %s370_s29, 4  ;;  %s735_s22 = int_to_ptr.hbm [resolvable:$true] %s734_s22 }
  0x2e   : > { %v629_v9 = vld [vmem:[%s230_s6] ss:$0 sm:$0xff]  ;;  %s736_s15 = scalar_lea.hbm %s735_s22, 16  ;;  %s740_s4 = scalar_lea.hbm %s1022_s3, 32 }
  0x2f   : > { %337 = vmatpush.bf16.msra.mxu0 %v544_v1  ;;  %p737_p7 = scmp.ne.s32.totalorder %s735_s22, %s736_s15  ;;  %p741_p10 = scmp.lt.s32.totalorder %s735_s22, %s1022_s3 }
  0x30   : > { %p742_p11 = scmp.lt.s32.totalorder %s740_s4, %s736_s15 }
  0x31   : > { %p738_p8 = pnand %p737_p7, %p928_p0 }
  0x32   : > { %p743_p12 = por %p742_p11, %p741_p10 }
  0x33   : > { %338 = vmatpush.bf16.msra.mxu0 %v543_v2  ;;  %p739_p9 = pneg %p738_p8 }
  0x35   : > { %p744_p13 = pnand %p743_p12, %p739_p9 }
  0x37   : > { %339 = vmatpush.bf16.msra.mxu0 %v542_v3 }
  0x3b   : > { %340 = vmatpush.bf16.msra.mxu0 %v541_v4 }
  0x3f   : > { %341 = vmatpush.bf16.msra.mxu0 %v540_v5 }
  0x43   : > { %342 = vmatpush.bf16.msra.mxu0 %v539_v6 }
  0x47   : > { %343 = vmatpush.bf16.msra.mxu0 %v538_v7 }
  0x4a   : > { %344 = vmatmul.bf16.vlgmr.msra.gmra.mxu0 %v537_v8 }
  0xc7   : > { %v345_v10 = vpop.f32.mrf.mxu0 }
  0xc8   : > { %v346_v11 = vadd.f32 %v629_v9, %v345_v10 }
  0xca   : > { %350 = vst [vmem:[%s257_s26] sm:$0xff] %v346_v11 }
  0xcf   : > { %v347_v12 = vpop.f32.mrf.mxu0 }
  0xd0   : > { %v348_v13 = vadd.f32 %v629_v9, %v347_v12 }
  0xd2   : > { %351 = vst [vmem:[%s257_s26 + $0x8] sm:$0xff] %v348_v13 }
  0xd3   : > { %747 = shalt.err (!%p744_p13)
}
  0xd4   : > { %s815_s30 = smov 128   ;;  %s816_s6 = smov 8  }
  0xd5   : > { %555 = dma.vmem_to_hbm [thread:$0]  (%p928_p0), %s368_s27, 256, %s370_s29, %s353_s11, %s815_s30, %s815_s30, %s816_s6  }
  0xd6 PF: > { %s384_s7 = sand.u32 1, %s790_s12   ;;  %p569_p3 = pnand %p487_p4, %p932_p2 }
  0xd7   : > { %s385_s8 = scalar_lea.sflag [#allocation4], %s384_s7 }
  0xd8   : > { %p570_p5 = pneg %p569_p3 }
  0xda   : > { %785 = dma.done.wait (%p570_p5), %s385_s8, 256  }
  0xdb   : > { %787 = vsyncadd (%p570_p5), %s385_s8, 4294967040  ;;  %s20_s17 = sadd.s32 1, %s810_s17   ;;  %s1029_s12 = smov %s794_s13 }
  0xdc   : > { %p17_p1 = scmp.ge.s32.totalorder %s20_s17, 4   ;;  %s1030_s13 = smov %s798_s14 }
  0xdd   : > { %s1031_s14 = smov %s888_s24  ;;  %s1032_s15 = smov %s806_s16 }
  0xde   : > { %s1033_s16 = smov %s1035_s18  ;;  %19 = sbr.rel (!%p17_p1) target bundleno = 7 (0x7), region = 92 }
  0xe3   :  { %391 = vsyncpa [#allocation3], 1 }
  0xe4   :  { %393 = vsyncpa [#allocation3 + $0x1], 1 }
  0xe5   :  { %394 = vsyncpa [#allocation6], 1 }
  0xe6   :  { %395 = vsyncpa [#allocation4], 1 }
  0xe7   :  { %397 = vsyncpa [#allocation4 + $0x1], 1 }

</bundles_post_ra>
